<compile_context>
chip_gen: v7x
topology: tpu7x:2x2x1
jax: 0.10.0
libtpu: 0.0.40
codegen_flags: <defaults>
</compile_context>

<pallas_src>
import functools

import jax
import jax.numpy as jnp
from jax.experimental import pallas as pl
from jax.experimental.pallas import tpu as pltpu


# --------------------------------------------------------------------------- #
# helpers
# --------------------------------------------------------------------------- #
def _round_up(x, m):
    return -(-x // m) * m


def _cdiv(a, b):
    return -(-a // b)


def _sublane_multiple(dtype):
    itemsize = jnp.dtype(dtype).itemsize
    if itemsize >= 4:
        return 8
    if itemsize == 2:
        return 16      # bf16 packs two rows per sublane
    return 32          # int8 / fp8


@functools.lru_cache(maxsize=1)
def _vmem_limit_bytes():
    # ~3/4 of physical VMEM, capped at 96 MiB:
    #   v5e/v6e (128 MiB physical) -> 96 MiB, v7x (64 MiB physical) -> 48 MiB.
    try:
        info = pltpu.get_tpu_info()
        cap = int(getattr(info, "vmem_capacity_bytes", 64 << 20))
    except Exception:
        cap = 64 << 20  # conservative fallback, safe on every generation
    return int(min(cap * 3 // 4, 96 << 20))


# --------------------------------------------------------------------------- #
# kernels
# --------------------------------------------------------------------------- #
def _kernel_single_k(x_ref, w_ref, b_ref, o_ref):
    # Whole feature dim in one step: no scratch accumulator, no extra VMEM
    # read/write per tile.  f32 MXU accumulation + f32 bias epilogue.
    acc = jnp.dot(x_ref[...], w_ref[...], preferred_element_type=jnp.float32)
    o_ref[...] = (acc + b_ref[...].astype(jnp.float32)).astype(o_ref.dtype)


def _kernel_multi_k(x_ref, w_ref, b_ref, o_ref, acc_ref):
    # x_ref: (tm, tk)  w_ref: (tk, tc)  b_ref: (1, tc)  o_ref: (tm, tc)
    # acc_ref: (tm, tc) f32 scratch, resident across the K (last) grid axis.
    k = pl.program_id(2)

    @pl.when(k == 0)
    def _():
        acc_ref[...] = jnp.zeros_like(acc_ref)

    acc_ref[...] += jnp.dot(
        x_ref[...], w_ref[...], preferred_element_type=jnp.float32
    )

    @pl.when(k == pl.num_programs(2) - 1)
    def _():
        o_ref[...] = (acc_ref[...] + b_ref[...].astype(jnp.float32)).astype(
            o_ref.dtype
        )


# --------------------------------------------------------------------------- #
# tiling plans
# --------------------------------------------------------------------------- #
def _plan_weights(D, C, *, tk_max, tc_max, compute_dtype):
    """Static plan for the (feature, class) axes; computed once at init."""
    sub = _sublane_multiple(compute_dtype)

    # Class (lane) axis: even 128-multiple split -> pad waste < 128 lanes total.
    Cp = _round_up(C, 128)
    nc = _cdiv(Cp, tc_max)
    tc = _round_up(_cdiv(Cp, nc), 128)
    Cp = tc * nc
    # Keep >= 2 parallel class blocks when possible so both v7x TensorCores get
    # work even when the batch collapses to one tile (no-op on 1-TC v5e/v6e).
    if nc == 1 and Cp >= 256:
        nc = 2
        tc = _round_up(_cdiv(Cp, 2), 128)
        Cp = tc * nc

    # Feature (contraction) axis.
    Dp_min = _round_up(D, sub)
    if Dp_min <= tk_max:
        nk, tk, Dp = 1, Dp_min, Dp_min       # fast path: single K step
    else:
        nk = _cdiv(D, tk_max)
        tk = _round_up(_cdiv(D, nk), 128)    # split K tiles must be 128-aligned
        Dp = tk * nk

    return dict(tc=tc, Cp=Cp, nc=nc, tk=tk, Dp=Dp, nk=nk)


def _plan_batch(B, *, tm_max, compute_dtype):
    sub = _sublane_multiple(compute_dtype)
    Bp = _round_up(B, sub)
    nb = _cdiv(Bp, tm_max)
    tm = _round_up(_cdiv(Bp, nb), sub)       # even split -> minimal pad waste
    Bp = tm * nb
    return tm, Bp, nb


# --------------------------------------------------------------------------- #
# fused forward (expects pre-padded, pre-cast weights)
# --------------------------------------------------------------------------- #
def _fused_forward(x, w_pad, b_pad, plan, *, tm_max, compute_dtype):
    """x: (B, D) unpadded; w_pad: (Dp, Cp) compute_dtype; b_pad: (1, Cp) f32."""
    B, D = x.shape
    out_dtype = x.dtype
    tc, Cp, nc = plan["tc"], plan["Cp"], plan["nc"]
    tk, Dp, nk = plan["tk"], plan["Dp"], plan["nk"]
    tm, Bp, nb = _plan_batch(B, tm_max=tm_max, compute_dtype=compute_dtype)

    # Only the (small, per-call) activation is padded / cast here.
    if (Bp, Dp) != (B, D):
        x = jnp.pad(x, ((0, Bp - B), (0, Dp - D)))
    x = x.astype(compute_dtype)

    cost = pl.CostEstimate(
        flops=2 * Bp * Dp * Cp,
        transcendentals=0,
        bytes_accessed=(
            x.size * x.dtype.itemsize
            + w_pad.size * w_pad.dtype.itemsize
            + b_pad.size * b_pad.dtype.itemsize
            + Bp * Cp * jnp.dtype(out_dtype).itemsize
        ),
    )
    compiler_params = pltpu.CompilerParams(
        dimension_semantics=(
            ("parallel", "parallel", "arbitrary") if nk > 1
            else ("parallel", "parallel")
        ),
        vmem_limit_bytes=_vmem_limit_bytes(),
    )

    if nk == 1:
        out = pl.pallas_call(
            _kernel_single_k,
            out_shape=jax.ShapeDtypeStruct((Bp, Cp), out_dtype),
            grid_spec=pltpu.PrefetchScalarGridSpec(
                num_scalar_prefetch=0,
                grid=(nb, nc),
                in_specs=[
                    pl.BlockSpec((tm, Dp), lambda i, j: (i, 0)),   # x tile
                    pl.BlockSpec((Dp, tc), lambda i, j: (0, j)),   # fused weights
                    pl.BlockSpec((1, tc), lambda i, j: (0, j)),    # fused bias
                ],
                out_specs=pl.BlockSpec((tm, tc), lambda i, j: (i, j)),
            ),
            compiler_params=compiler_params,
            cost_estimate=cost,
        )(x, w_pad, b_pad)
    else:
        out = pl.pallas_call(
            _kernel_multi_k,
            out_shape=jax.ShapeDtypeStruct((Bp, Cp), out_dtype),
            grid_spec=pltpu.PrefetchScalarGridSpec(
                num_scalar_prefetch=0,
                grid=(nb, nc, nk),
                in_specs=[
                    pl.BlockSpec((tm, tk), lambda i, j, k: (i, k)),
                    pl.BlockSpec((tk, tc), lambda i, j, k: (k, j)),
                    pl.BlockSpec((1, tc), lambda i, j, k: (0, j)),
                ],
                out_specs=pl.BlockSpec((tm, tc), lambda i, j, k: (i, j)),
                scratch_shapes=[pltpu.VMEM((tm, tc), jnp.float32)],
            ),
            compiler_params=compiler_params,
            cost_estimate=cost,
        )(x, w_pad, b_pad)

    # Strip batch padding; class padding is stripped by the per-head slices.
    return out[:B]


# --------------------------------------------------------------------------- #
# module wrapper
# --------------------------------------------------------------------------- #
class AllClassifiersPallas:
    """JAX/Pallas equivalent of AllClassifiers holding linear probe heads.

    heads: dict name -> (W of shape (D, C_k), b of shape (C_k,)).
    Weights are concatenated along the class axis, padded to the tile plan and
    cast to `compute_dtype` ONCE here; the forward pass only pads/casts x.
    """

    def __init__(self, heads, *, compute_dtype=jnp.bfloat16,
                 tm=512, tk=512, tc=1024):
        self.names = list(heads.keys())
        self.sizes = [int(heads[k][0].shape[1]) for k in self.names]
        self.compute_dtype = jnp.dtype(compute_dtype)
        self._tm_max = int(tm)

        w_all = jnp.concatenate([heads[k][0] for k in self.names], axis=1)
        b_all = jnp.concatenate([heads[k][1] for k in self.names], axis=0)
        D, C = w_all.shape
        self.feat_dim, self.num_classes = D, C

        self.plan = _plan_weights(
            D, C, tk_max=int(tk), tc_max=int(tc),
            compute_dtype=self.compute_dtype,
        )
        Dp, Cp = self.plan["Dp"], self.plan["Cp"]

        if (Dp, Cp) != (D, C):
            w_all = jnp.pad(w_all, ((0, Dp - D), (0, Cp - C)))
        self.w_pad = jnp.asarray(w_all, dtype=self.compute_dtype)
        if Cp != C:
            b_all = jnp.pad(b_all, (0, Cp - C))
        self.b_pad = jnp.asarray(b_all, dtype=jnp.float32).reshape(1, Cp)

    def __len__(self):
        return len(self.names)

    def __call__(self, x):
        lead = x.shape[:-1]
        x2 = x.reshape(-1, x.shape[-1])
        fused = _fused_forward(
            x2, self.w_pad, self.b_pad, self.plan,
            tm_max=self._tm_max, compute_dtype=self.compute_dtype,
        )
        out, off = {}, 0
        for name, c in zip(self.names, self.sizes):
            # TODO(synk): per-head slices are not 128-lane aligned; return the
            # fused array + offsets (or pad heads to 128) if this shows up.
            out[name] = fused[:, off:off + c].reshape(*lead, c)
            off += c
        return out


# --------------------------------------------------------------------------- #
# self-test
# --------------------------------------------------------------------------- #
if __name__ == "__main__":
    key = jax.random.PRNGKey(0)

    def make_heads(D, head_specs):
        heads = {}
        for i, (name, c) in enumerate(head_specs.items()):
            kw, kb = jax.random.split(jax.random.fold_in(key, 7 * i + 1))
            w = jax.random.normal(kw, (D, c), dtype=jnp.float32) * 0.02
            b = jax.random.normal(kb, (c,), dtype=jnp.float32) * 0.01
            heads[name] = (w, b)
        return heads

    def run(model, x):
        outputs = model(x)
        return jax.tree_util.tree_map(jax.block_until_ready, outputs)

    # 1) Strict f32 check (small aligned shapes).
    heads = make_heads(32, {"head_10cls": 10, "head_24cls": 24, "head_7cls": 7})
    x = jax.random.normal(jax.random.fold_in(key, 100), (16, 32), jnp.float32)
    outs = run(AllClassifiersPallas(heads, compute_dtype=jnp.float32), x)
    for name, (w, b) in heads.items():
        ref = x @ w + b
        assert outs[name].shape == ref.shape, name
        assert jnp.max(jnp.abs(outs[name] - ref)) < 1e-4, name

    # 2) Ragged shapes (batch / feature / class padding paths), f32.
    heads = make_heads(40, {"a": 5, "b": 130})
    x = jax.random.normal(jax.random.fold_in(key, 200), (13, 40), jnp.float32)
    outs = run(AllClassifiersPallas(heads, compute_dtype=jnp.float32), x)
    for name, (w, b) in heads.items():
        ref = x @ w + b
        assert outs[name].shape == ref.shape, name
        assert jnp.max(jnp.abs(outs[name] - ref)) < 1e-4, name

    # 3) Default bf16 compute + multi-K accumulator path (tk forced to 128).
    heads = make_heads(256, {"a": 10, "b": 200})
    x = jax.random.normal(jax.random.fold_in(key, 300), (16, 256), jnp.float32)
    outs = run(AllClassifiersPallas(heads, tk=128), x)  # bf16 default
    for name, (w, b) in heads.items():
        ref = jnp.dot(x.astype(jnp.bfloat16), w.astype(jnp.bfloat16),
                      preferred_element_type=jnp.float32) + b
        assert outs[name].shape == ref.shape, name
        assert jnp.max(jnp.abs(outs[name] - ref)) < 2e-3, name

    print("KERNEL_OK")
</pallas_src>

<mosaic_0001>
module attributes {stable_mosaic.version = 11 : i64} {
  func.func @_kernel_single_k(%arg0: i32, %arg1: i32, %arg2: memref<16x32xf32, #tpu.memory_space<vmem>>, %arg3: memref<32x128xf32, #tpu.memory_space<vmem>>, %arg4: memref<1x128xf32, #tpu.memory_space<vmem>>, %arg5: memref<16x128xf32, #tpu.memory_space<vmem>>) attributes {dimension_semantics = [#tpu.dimension_semantics<parallel>, #tpu.dimension_semantics<parallel>], iteration_bounds = array<i64: 1, 1>, scalar_prefetch = 0 : i64, scratch_operands = 0 : i64, tpu.core_type = #tpu.core_type<tc>, window_params = [{transform_indices = @transform_0, window_bounds = array<i64: 16, 32>}, {transform_indices = @transform_1, window_bounds = array<i64: 32, 128>}, {transform_indices = @transform_2, window_bounds = array<i64: 1, 128>}, {transform_indices = @transform_3, window_bounds = array<i64: 16, 128>}]} {
    %c0 = arith.constant 0 : index
    %c0_0 = arith.constant 0 : index
    %0 = vector.load %arg2[%c0, %c0_0] : memref<16x32xf32, #tpu.memory_space<vmem>>, vector<16x32xf32>
    %c0_1 = arith.constant 0 : index
    %c0_2 = arith.constant 0 : index
    %1 = vector.load %arg3[%c0_1, %c0_2] : memref<32x128xf32, #tpu.memory_space<vmem>>, vector<32x128xf32>
    %cst = arith.constant dense<0.000000e+00> : vector<16x128xf32>
    %2 = tpu.matmul %0, %1, %cst {dimension_numbers = #tpu.dot_dimension_numbers<[1], [0], [0], [1], [0, 0, 1, 1], [], []>} : vector<16x32xf32>, vector<32x128xf32>, vector<16x128xf32> -> vector<16x128xf32>
    %c0_3 = arith.constant 0 : index
    %c0_4 = arith.constant 0 : index
    %3 = vector.load %arg4[%c0_3, %c0_4] : memref<1x128xf32, #tpu.memory_space<vmem>>, vector<1x128xf32>
    %4 = vector.broadcast %3 : vector<1x128xf32> to vector<16x128xf32>
    %5 = arith.addf %2, %4 : vector<16x128xf32>
    %c0_5 = arith.constant 0 : index
    %c0_6 = arith.constant 0 : index
    %6 = vector.load %arg5[%c0_5, %c0_6] : memref<16x128xf32, #tpu.memory_space<vmem>>, vector<16x128xf32>
    tpu.vector_store %arg5[%c0_5, %c0_6], %5 {strides = array<i32>} : memref<16x128xf32, #tpu.memory_space<vmem>>, vector<16x128xf32>,
    return
  }
  func.func @transform_0(%arg0: i32, %arg1: i32) -> (i32, i32) {
    %c0_i32 = arith.constant 0 : i32
    %c0_i32_0 = arith.constant 0 : i32
    return %arg0, %c0_i32 : i32, i32
  }
  func.func @transform_1(%arg0: i32, %arg1: i32) -> (i32, i32) {
    %c0_i32 = arith.constant 0 : i32
    %c0_i32_0 = arith.constant 0 : i32
    return %c0_i32, %arg1 : i32, i32
  }
  func.func @transform_2(%arg0: i32, %arg1: i32) -> (i32, i32) {
    %c0_i32 = arith.constant 0 : i32
    %c0_i32_0 = arith.constant 0 : i32
    return %c0_i32, %arg1 : i32, i32
  }
  func.func @transform_3(%arg0: i32, %arg1: i32) -> (i32, i32) {
    %c0_i32 = arith.constant 0 : i32
    return %arg0, %arg1 : i32, i32
  }
}

</mosaic_0001>

<bundles_post_ra>
// kernel: tpu_custom_call.1
= control target key start
LH: loop header
LB: loop body
LE: loop exit
PB: predicated region body
PF: predicated region fallthrough
CT: control target
= control target key end

     0   :  { %8 = vsyncpa [#allocation3], 0  ;;  %s336_s0 = inlined_call_operand.hbm [shape: f32[16,32], index: 0, kind: input, shape index: {}]   ;;  %s337_s1 = inlined_call_operand.hbm [shape: f32[32,128], index: 1, kind: input, shape index: {}]   ;;  %s338_s2 = inlined_call_operand.vmem [shape: f32[1,128], index: 2, kind: input, shape index: {}]   ;;  %s339_s3 = inlined_call_operand.hbm [shape: f32[16,128], index: 3, kind: output, shape index: {}]  }
   0x1   :  { %9 = vsyncpa [#allocation6], 0 }
   0x2   :  { %10 = vsyncpa [#allocation4], 0  ;;  %s263_s12 = smov [#allocation2]   ;;  %s191_s16 = scalar_lea.hbm %s336_s0, 256 }
   0x3   :  { %s16_s13 = sshll.u32 %s263_s12, 4  ;;  %p192_p0 = scmp.ne.s32.totalorder %s336_s0, %s191_s16  ;;  %s17_s13 = int_to_ptr.vmem [resolvable:$true] %s16_s13 }
   0x4   :  { %p195_p1 = scmp.lt.u32.totalorder %s191_s16, %s336_s0 }
   0x6   :  { %p197_p2 = pnand %p195_p1, %p192_p0 }
   0x8   :  { %200 = shalt.err (!%p197_p2)
}
   0x9   :  { %s201_s21 = scalar_lea.vmem %s17_s13, 256  ;;  %p206_p4 = scmp.lt.s32.totalorder %s17_s13, %s17_s13 }
   0xa   :  { %p202_p3 = scmp.ne.s32.totalorder %s17_s13, %s201_s21  ;;  %p207_p5 = scmp.lt.s32.totalorder %s201_s21, %s201_s21 }
   0xc   :  { %p208_p6 = por %p207_p5, %p206_p4 }
   0xe   :  { %p209_p7 = pnand %p208_p6, %p202_p3 }
  0x10   :  { %212 = shalt.err (!%p209_p7)
}
  0x11   :  { %s264_s22 = smov 128   ;;  %s265_s23 = smov 8  }
  0x12   :  { %22 = dma.hbm_to_vmem [thread:$0]  %s336_s0, 256, %s17_s13, [#allocation3], %s264_s22, %s264_s22, %s265_s23  }
  0x13   :  { %s266_s26 = smov [#allocation5]   ;;  %s213_s30 = scalar_lea.hbm %s337_s1, 512 }
  0x14   :  { %s28_s27 = sshll.u32 %s266_s26, 4  ;;  %p214_p8 = scmp.ne.s32.totalorder %s337_s1, %s213_s30  ;;  %s29_s27 = int_to_ptr.vmem [resolvable:$true] %s28_s27 }
  0x15   :  { %p217_p9 = scmp.lt.u32.totalorder %s213_s30, %s337_s1 }
  0x17   :  { %p219_p10 = pnand %p217_p9, %p214_p8 }
  0x19   :  { %222 = shalt.err (!%p219_p10)
}
  0x1a   :  { %s223_s8 = scalar_lea.vmem %s29_s27, 512  ;;  %p228_p12 = scmp.lt.s32.totalorder %s29_s27, %s29_s27 }
  0x1b   :  { %p224_p11 = scmp.ne.s32.totalorder %s29_s27, %s223_s8  ;;  %p229_p13 = scmp.lt.s32.totalorder %s223_s8, %s223_s8 }
  0x1d   :  { %p230_p0 = por %p229_p13, %p228_p12 }
  0x1f   :  { %p231_p1 = pnand %p230_p0, %p224_p11 }
  0x21   :  { %234 = shalt.err (!%p231_p1)
}
  0x22   :  { %34 = dma.hbm_to_vmem [thread:$0]  %s337_s1, 512, %s29_s27, [#allocation6], %s264_s22, %s264_s22, %s265_s23  }
  0x23   :  { %257 = dma.done.wait [#allocation3], 256  }
  0x24   :  { %258 = vsyncadd [#allocation3], 4294967040 }
  0x25   :  { %259 = dma.done.wait [#allocation6], 512  }
  0x26   :  { %260 = vsyncadd [#allocation6], 4294966784  ;;  %vm56_vm0 = vcmask 261120   ;;  %v45_v0 = vld [vmem:[#allocation5] sm:$0xff]  ;;  %v46_v1 = vld [vmem:[#allocation5 + $0x8] sm:$0xff]  ;;  %s267_s11 = smov [#allocation7]  }
  0x27   :  { %v47_v2 = vld [vmem:[#allocation5 + $0x10] sm:$0xff]  ;;  %v178_v3 = vpack.c.bf16 %v46_v1, %v45_v0  ;;  %v48_v4 = vld [vmem:[#allocation5 + $0x18] sm:$0xff]  ;;  %s145_s12 = sshll.u32 %s267_s11, 4  ;;  %s146_s12 = int_to_ptr.vmem [resolvable:$true] %s145_s12 }
  0x28   :  { %v43_v5 = vld [vmem:[#allocation2] sm:$0xff]  ;;  %v182_v6 = vpack.c.bf16 %v48_v4, %v47_v2  ;;  %v44_v7 = vld [vmem:[#allocation2 + $0x8] sm:$0xff]  ;;  %s235_s13 = scalar_lea.vmem %s146_s12, 256  ;;  %p240_p3 = scmp.lt.s32.totalorder %s146_s12, %s146_s12 }
  0x29   :  { %175 = vmatprep.mubr.msk.f32.mxu0 %vm56_vm0, %v43_v5  ;;  %179 = vmatprep.subr.bf16.mxu0 %v178_v3  ;;  %v158_v8 = vld [vmem:[%s338_s2] ss:$0 sm:$0xff]  ;;  %p236_p2 = scmp.ne.s32.totalorder %s146_s12, %s235_s13  ;;  %p241_p4 = scmp.lt.s32.totalorder %s235_s13, %s235_s13 }
  0x2a   :  { %181 = vmatpush3.bf16.msra.mxu0 %v178_v3 }
  0x2b   :  { %183 = vmatprep.subr.bf16.mxu0 %v182_v6  ;;  %p242_p5 = por %p241_p4, %p240_p3 }
  0x2d   :  { %p243_p6 = pnand %p242_p5, %p236_p2 }
  0x2e   :  { %185 = vmatpush3.bf16.msra.mxu0 %v182_v6 }
  0x31   :  { %176 = vmatmul.mubr.msk.f32.vlgmr.msra.gmra.mrb[0].mxu0 %vm56_vm0, %v44_v7 }
 0x104   :  { %v177_v9 = vpop.f32.mrb[0].mxu0 }
 0x105   :  { %v135_v10 = vadd.f32 %v177_v9, %v158_v8  ;;  %v129_v11 = vpop.f32.mrb[1].mxu0 }
 0x106   :  { %v130_v12 = vadd.f32 %v158_v8, %v129_v11 }
 0x107   :  { %139 = vst [vmem:[#allocation7 + $0x8] sm:$0xff] %v135_v10 }
 0x108   :  { %138 = vst [vmem:[#allocation7] sm:$0xff] %v130_v12 }
 0x109   :  { %246 = shalt.err (!%p243_p6)
}
 0x10a   :  { %s247_s2 = scalar_lea.hbm %s339_s3, 256 }
 0x10b   :  { %p248_p7 = scmp.ne.s32.totalorder %s339_s3, %s247_s2  ;;  %p251_p8 = scmp.lt.u32.totalorder %s247_s2, %s339_s3 }
 0x10d   :  { %p253_p9 = pnand %p251_p8, %p248_p7 }
 0x10f   :  { %256 = shalt.err (!%p253_p9)
}
 0x110   :  { %151 = dma.vmem_to_hbm [thread:$0]  %s146_s12, 256, %s339_s3, [#allocation4], %s264_s22, %s264_s22, %s265_s23  }
 0x111   :  { %261 = dma.done.wait [#allocation4], 256  }
 0x112   :  { %262 = vsyncadd [#allocation4], 4294967040 }
 0x113   :  { %155 = vsyncpa [#allocation3], 1 }
 0x114   :  { %156 = vsyncpa [#allocation6], 1 }
 0x115   :  { %157 = vsyncpa [#allocation4], 1 }

</bundles_post_ra>
